<compile_context>
chip_gen: v7x
topology: tpu7x:2x2x1
jax: 0.10.0
libtpu: 0.0.40
codegen_flags: <defaults>
</compile_context>

<pallas_src>
import math
import functools

import numpy as np
import jax
import jax.numpy as jnp
from jax.experimental import pallas as pl
from jax.experimental.pallas import tpu as pltpu


_MIB = 1024 * 1024


# ------------------------------ helpers -------------------------------------

def _logit(p):
    """Threshold t such that sigmoid(x) >= p  <=>  x >= t (p in (0,1))."""
    p = float(p)
    if p <= 0.0:
        return float("-inf")     # everything kept (sigmoid > 0 always)
    if p >= 1.0:
        return float("inf")      # nothing kept
    return math.log(p / (1.0 - p))


def _vmem_capacity_bytes():
    try:
        return int(pltpu.get_tpu_info().vmem_capacity_bytes)
    except Exception:
        return 64 * _MIB         # conservative (v7x per-TC VMEM)


def _tile_bytes(cb, T, D, in_isize, mask_isize):
    """Approximate per-step VMEM working set for a column tile of width cb
    (includes double buffering and sublane/lane padding)."""
    tok = 2 * max(T, 8) * max(D, 128) * in_isize      # resident tokens tile
    cols = 2 * max(D, 8) * cb * in_isize              # (D, cb) column tile
    thr = 2 * 8 * cb * 4                              # (1, cb) f32 thresholds
    msk = 2 * max(T, 32) * cb * mask_isize            # int8 output tile
    inter = max(T, 8) * cb * 4                        # f32 dot intermediate
    return tok + cols + thr + msk + inter


def _pick_col_block(needed_cols, T, D, in_isize, mask_isize, budget,
                    max_col_block=None):
    """Largest lane-dense (multiple of 128) column tile whose working set fits
    the VMEM budget; never wider than the (128-padded) number of columns."""
    need128 = ((needed_cols + 127) // 128) * 128
    cb = 128
    for cand in (8192, 4096, 2048, 1024, 512, 256, 128):
        if _tile_bytes(cand, T, D, in_isize, mask_isize) <= budget:
            cb = cand
            break
    cb = min(cb, need128)
    if max_col_block is not None:
        assert max_col_block % 128 == 0
        cb = min(cb, max_col_block)
    return cb


# ----------------------------- Pallas kernel --------------------------------

def _prompt_mask_kernel(tok_ref, cols_ref, thr_ref, mask_ref):
    # tok_ref:  (T, D)           resident across all column steps
    # cols_ref: (D, col_block)   current column tile (tokens.T | x.T | pad)
    # thr_ref:  (1, col_block)   per-column logit threshold (f32, +inf for pad)
    # mask_ref: (T, col_block)   int8 adjacency mask tile
    dot = jnp.dot(tok_ref[...], cols_ref[...],
                  preferred_element_type=jnp.float32)
    mask_ref[...] = (dot >= thr_ref[...]).astype(mask_ref.dtype)


@functools.lru_cache(maxsize=None)
def _build_mask_call(T, D, total_cols, col_block, in_dtype, mask_dtype,
                     vmem_limit):
    in_isize = np.dtype(in_dtype).itemsize
    mask_isize = np.dtype(mask_dtype).itemsize
    grid = (total_cols // col_block,)

    cost = pl.CostEstimate(
        flops=2 * T * total_cols * D,
        transcendentals=0,
        bytes_accessed=(T * D * in_isize + D * total_cols * in_isize
                        + total_cols * 4 + T * total_cols * mask_isize),
    )

    call = pl.pallas_call(
        _prompt_mask_kernel,
        out_shape=jax.ShapeDtypeStruct((T, total_cols), mask_dtype),
        grid_spec=pltpu.PrefetchScalarGridSpec(
            num_scalar_prefetch=0,
            grid=grid,
            in_specs=[
                pl.BlockSpec((T, D), lambda j: (0, 0)),            # tokens: resident
                pl.BlockSpec((D, col_block), lambda j: (0, j)),    # column tile
                pl.BlockSpec((1, col_block), lambda j: (0, j)),    # threshold row
            ],
            out_specs=pl.BlockSpec((T, col_block), lambda j: (0, j)),
        ),
        compiler_params=pltpu.CompilerParams(
            # No revisited output block -> the column axis is truly parallel
            # (lets the v7x megacore shard it; neutral on single-TC chips).
            dimension_semantics=("parallel",),
            vmem_limit_bytes=vmem_limit,
        ),
        cost_estimate=cost,
    )
    return jax.jit(call)


def _fused_prompt_mask(tokens, x_all, inner_prune, cross_prune, *,
                       in_dtype=jnp.float32, mask_dtype=jnp.int8,
                       max_col_block=None):
    """One fused kernel launch.  Returns (mask (T, total_cols) int8, T, BN);
    mask[:, :T] is the inner adjacency mask, mask[:, T:T+BN] the cross mask.
    Padded columns are forced to 0 via a +inf threshold."""
    T, D = tokens.shape
    BN, D2 = x_all.shape
    assert D == D2, "token_dim mismatch between tokens and graph features"

    in_isize = np.dtype(in_dtype).itemsize
    mask_isize = np.dtype(mask_dtype).itemsize

    needed = T + BN
    cap = _vmem_capacity_bytes()
    budget = min(24 * _MIB, cap // 4)
    cb = _pick_col_block(needed, T, D, in_isize, mask_isize, budget,
                         max_col_block)
    total = ((needed + cb - 1) // cb) * cb
    ws = _tile_bytes(cb, T, D, in_isize, mask_isize)
    vmem_limit = int(min(cap // 2, max(4 * ws + 2 * _MIB, 16 * _MIB)))

    # Cast at the DMA boundary (not in-kernel) so bf16 actually halves HBM
    # reads; transpose to (D, cols) so the D=32 tile packs without lane padding
    # and the RHS is already in native MXU (K, N) order.
    tok_c = tokens.astype(in_dtype)
    cols = jnp.concatenate([tok_c.T, x_all.astype(in_dtype).T], axis=1)
    if total > needed:
        cols = jnp.pad(cols, ((0, 0), (0, total - needed)))

    thr = np.full((1, total), np.inf, dtype=np.float32)
    thr[0, :T] = _logit(inner_prune)
    thr[0, T:needed] = _logit(cross_prune)

    fn = _build_mask_call(int(T), int(D), int(total), int(cb),
                          in_dtype, mask_dtype, vmem_limit)
    mask = fn(tok_c, cols, jnp.asarray(thr))
    return mask, T, BN


def prompt_adjacency_masks(tokens, x_all, inner_prune, cross_prune, **kw):
    """Returns (inner_mask (T, T), cross_mask (T, B*N)) int8 device arrays."""
    mask, T, BN = _fused_prompt_mask(tokens, x_all, inner_prune, cross_prune,
                                     **kw)
    return mask[:, :T], mask[:, T:T + BN]


# ---------------------- PyG-style Batch bookkeeping (host) ------------------

def batch_from_data_list(data_list):
    xs, eis, bvec, ys = [], [], [], []
    node_offset = 0
    for i, d in enumerate(data_list):
        n = d["x"].shape[0]
        xs.append(d["x"])
        eis.append(d["edge_index"] + node_offset)
        bvec.append(np.full((n,), i, dtype=np.int64))
        ys.append(np.atleast_1d(np.asarray(d["y"], dtype=np.int64)))
        node_offset += n
    return {
        "x": np.concatenate(xs, axis=0),
        "edge_index": np.concatenate(eis, axis=1),
        "batch": np.concatenate(bvec, axis=0),
        "y": np.concatenate(ys, axis=0),
    }


# ------------------------------ HeavyPrompt ---------------------------------

class HeavyPromptJAX:
    """JAX/Pallas re-implementation of HeavyPrompt.forward."""

    def __init__(self, token_dim, token_num, cross_prune=0.1, inner_prune=0.01,
                 key=None, use_bf16=False):
        self.token_dim = token_dim
        self.token_num = token_num
        self.cross_prune = float(cross_prune)
        self.inner_prune = float(inner_prune)
        # bf16 at the DMA boundary halves HBM reads; f32 default keeps exact
        # parity with the torch reference (boundary dot products can flip mask
        # bits under bf16).
        self.in_dtype = jnp.bfloat16 if use_bf16 else jnp.float32
        if key is None:
            key = jax.random.PRNGKey(0)
        # kaiming_uniform_(nonlinearity='leaky_relu', mode='fan_in', a=0.01)
        a = 0.01
        gain = math.sqrt(2.0 / (1.0 + a * a))
        bound = gain * math.sqrt(3.0 / token_dim)   # fan_in = token_dim
        self.tokens = jax.random.uniform(
            key, (token_num, token_dim), dtype=jnp.float32,
            minval=-bound, maxval=bound)

    def forward(self, graph_batch):
        """graph_batch: list of dicts with keys 'x' (N, D), 'edge_index' (2, E), 'y'.
        Returns the prompted Batch equivalent (dict with x, edge_index, batch, y)."""
        tokens = self.tokens
        T = tokens.shape[0]

        sizes = [int(g["x"].shape[0]) for g in graph_batch]
        # TODO(synk): ragged graphs would need per-graph lengths via scalar
        # prefetch + in-kernel column masking; same-size graphs assumed here.
        assert len(set(sizes)) == 1, "all graphs in the batch must have equal N"
        N = sizes[0]

        # Flatten batch into the lane axis: (B*N, D).
        x_flat = jnp.concatenate(
            [jnp.asarray(g["x"], dtype=jnp.float32) for g in graph_batch],
            axis=0)

        # One fused kernel launch, one device->host pull for both masks.
        mask, _, BN = _fused_prompt_mask(
            tokens, x_flat, self.inner_prune, self.cross_prune,
            in_dtype=self.in_dtype)
        mask_np = np.asarray(jax.device_get(mask))
        inner_np = mask_np[:, :T]
        cross_np = mask_np[:, T:T + BN]     # drop padded columns before nonzero

        # --- host-side edge extraction (data-dependent sizes) ---
        ir, ic = np.nonzero(inner_np)
        inner_edge_index = np.stack([ir, ic], axis=0).astype(np.int64)

        tokens_np = np.asarray(tokens)
        re_graph_list = []
        for b, g in enumerate(graph_batch):
            g_edge_index = np.asarray(g["edge_index"], dtype=np.int64) + T
            cr, cc = np.nonzero(cross_np[:, b * N:(b + 1) * N])
            cross_edge_index = np.stack([cr, cc + T], axis=0).astype(np.int64)
            x = np.concatenate(
                [tokens_np, np.asarray(g["x"], dtype=np.float32)], axis=0)
            edge_index = np.concatenate(
                [inner_edge_index, g_edge_index, cross_edge_index], axis=1)
            re_graph_list.append({"x": x, "edge_index": edge_index, "y": g["y"]})

        return batch_from_data_list(re_graph_list)


# --------------------------------- main --------------------------------------

if __name__ == "__main__":
    key = jax.random.PRNGKey(0)
    k_tok, k_x0, k_x1, k_big = jax.random.split(key, 4)

    token_dim = 32      # D
    token_num = 8       # T
    num_nodes = 16      # N per graph
    batch = 2           # B

    prompt = HeavyPromptJAX(token_dim, token_num,
                            cross_prune=0.1, inner_prune=0.01, key=k_tok)

    def make_graph(kx, y):
        x = jax.random.normal(kx, (num_nodes, token_dim), dtype=jnp.float32)
        src = np.arange(num_nodes, dtype=np.int64)
        dst = (src + 1) % num_nodes
        edge_index = np.stack([src, dst], axis=0)   # simple ring graph
        return {"x": x, "edge_index": edge_index, "y": np.int64(y)}

    graph_batch = [make_graph(k_x0, 0), make_graph(k_x1, 1)]

    x_flat = jnp.concatenate([g["x"] for g in graph_batch],
                             axis=0).astype(jnp.float32)
    tok_np = np.asarray(prompt.tokens, dtype=np.float32)
    x_np = np.asarray(x_flat, dtype=np.float32)

    def check(got, ref_dot, thr, band):
        ref_mask = ref_dot >= thr
        borderline = np.abs(ref_dot - thr) < band
        got_b = np.asarray(got).astype(bool)
        assert np.all((got_b == ref_mask) | borderline), "mask mismatch"

    # --- f32 path (exact parity with the torch reference semantics) ---
    inner_m, cross_m = prompt_adjacency_masks(
        prompt.tokens, x_flat, prompt.inner_prune, prompt.cross_prune)
    jax.block_until_ready((inner_m, cross_m))
    check(inner_m, tok_np @ tok_np.T, _logit(prompt.inner_prune), 1e-3)
    check(cross_m, tok_np @ x_np.T, _logit(prompt.cross_prune), 1e-3)

    # --- bf16-at-DMA fast path (halves HBM reads); looser boundary band ---
    inner_b, cross_b = prompt_adjacency_masks(
        prompt.tokens, x_flat, prompt.inner_prune, prompt.cross_prune,
        in_dtype=jnp.bfloat16)
    jax.block_until_ready((inner_b, cross_b))
    check(inner_b, tok_np @ tok_np.T, _logit(prompt.inner_prune), 0.15)
    check(cross_b, tok_np @ x_np.T, _logit(prompt.cross_prune), 0.15)

    # --- forced multi-step tiling path (col_block=128, several grid steps) ---
    x_big = jax.random.normal(k_big, (512, token_dim), dtype=jnp.float32)
    inner_t, cross_t = prompt_adjacency_masks(
        prompt.tokens, x_big, prompt.inner_prune, prompt.cross_prune,
        max_col_block=128)
    jax.block_until_ready((inner_t, cross_t))
    xb_np = np.asarray(x_big, dtype=np.float32)
    check(inner_t, tok_np @ tok_np.T, _logit(prompt.inner_prune), 1e-3)
    check(cross_t, tok_np @ xb_np.T, _logit(prompt.cross_prune), 1e-3)

    # --- full forward (module semantics) ---
    out = prompt.forward(graph_batch)

    n_per_graph = token_num + num_nodes
    assert out["x"].shape == (batch * n_per_graph, token_dim)
    assert out["edge_index"].shape[0] == 2
    assert out["batch"].shape == (batch * n_per_graph,)
    assert out["y"].shape == (batch,)
    assert out["edge_index"].min() >= 0
    assert out["edge_index"].max() < batch * n_per_graph

    print("KERNEL_OK")
</pallas_src>

<mosaic_0001>
module attributes {stable_mosaic.version = 11 : i64} {
  func.func @_prompt_mask_kernel(%arg0: i32, %arg1: memref<8x32xf32, #tpu.memory_space<vmem>>, %arg2: memref<32x128xf32, #tpu.memory_space<vmem>>, %arg3: memref<1x128xf32, #tpu.memory_space<vmem>>, %arg4: memref<8x128xi8, #tpu.memory_space<vmem>>) attributes {dimension_semantics = [#tpu.dimension_semantics<parallel>], iteration_bounds = array<i64: 1>, scalar_prefetch = 0 : i64, scratch_operands = 0 : i64, tpu.core_type = #tpu.core_type<tc>, window_params = [{pipeline_mode = #tpu.pipeline_mode<synchronous>, transform_indices = @transform_0, window_bounds = array<i64: 8, 32>}, {transform_indices = @transform_1, window_bounds = array<i64: 32, 128>}, {transform_indices = @transform_2, window_bounds = array<i64: 1, 128>}, {transform_indices = @transform_3, window_bounds = array<i64: 8, 128>}]} {
    %c0 = arith.constant 0 : index
    %c0_0 = arith.constant 0 : index
    %0 = vector.load %arg1[%c0, %c0_0] : memref<8x32xf32, #tpu.memory_space<vmem>>, vector<8x32xf32>
    %c0_1 = arith.constant 0 : index
    %c0_2 = arith.constant 0 : index
    %1 = vector.load %arg2[%c0_1, %c0_2] : memref<32x128xf32, #tpu.memory_space<vmem>>, vector<32x128xf32>
    %cst = arith.constant dense<0.000000e+00> : vector<8x128xf32>
    %2 = tpu.matmul %0, %1, %cst {dimension_numbers = #tpu.dot_dimension_numbers<[1], [0], [0], [1], [0, 0, 1, 1], [], []>} : vector<8x32xf32>, vector<32x128xf32>, vector<8x128xf32> -> vector<8x128xf32>
    %c0_3 = arith.constant 0 : index
    %c0_4 = arith.constant 0 : index
    %3 = vector.load %arg3[%c0_3, %c0_4] : memref<1x128xf32, #tpu.memory_space<vmem>>, vector<1x128xf32>
    %4 = vector.broadcast %3 : vector<1x128xf32> to vector<8x128xf32>
    %5 = arith.cmpf oge, %2, %4 : vector<8x128xf32>
    %6 = arith.extui %5 : vector<8x128xi1> to vector<8x128xi8>
    %c0_5 = arith.constant 0 : index
    %c0_6 = arith.constant 0 : index
    %7 = vector.load %arg4[%c0_5, %c0_6] : memref<8x128xi8, #tpu.memory_space<vmem>>, vector<8x128xi8>
    tpu.vector_store %arg4[%c0_5, %c0_6], %6 {strides = array<i32>} : memref<8x128xi8, #tpu.memory_space<vmem>>, vector<8x128xi8>,
    return
  }
  func.func @transform_0(%arg0: i32) -> (i32, i32) {
    %c0_i32 = arith.constant 0 : i32
    %c0_i32_0 = arith.constant 0 : i32
    %c0_i32_1 = arith.constant 0 : i32
    return %c0_i32, %c0_i32_0 : i32, i32
  }
  func.func @transform_1(%arg0: i32) -> (i32, i32) {
    %c0_i32 = arith.constant 0 : i32
    %c0_i32_0 = arith.constant 0 : i32
    return %c0_i32, %arg0 : i32, i32
  }
  func.func @transform_2(%arg0: i32) -> (i32, i32) {
    %c0_i32 = arith.constant 0 : i32
    %c0_i32_0 = arith.constant 0 : i32
    return %c0_i32, %arg0 : i32, i32
  }
  func.func @transform_3(%arg0: i32) -> (i32, i32) {
    %c0_i32 = arith.constant 0 : i32
    %c0_i32_0 = arith.constant 0 : i32
    return %c0_i32, %arg0 : i32, i32
  }
}

</mosaic_0001>

<bundles_post_ra>
// kernel: tpu_custom_call.1
= control target key start
LH: loop header
LB: loop body
LE: loop exit
PB: predicated region body
PF: predicated region fallthrough
CT: control target
= control target key end

     0   :  { %8 = vsyncpa [#allocation3], 0  ;;  %s330_s0 = inlined_call_operand.hbm [shape: f32[8,32], index: 0, kind: input, shape index: {}]   ;;  %s331_s1 = inlined_call_operand.hbm [shape: f32[32,128], index: 1, kind: input, shape index: {}]   ;;  %s332_s2 = inlined_call_operand.vmem [shape: f32[1,128], index: 2, kind: input, shape index: {}]   ;;  %s333_s3 = inlined_call_operand.hbm [shape: s8[8,128], index: 3, kind: output, shape index: {}]  }
   0x1   :  { %9 = vsyncpa [#allocation6], 0 }
   0x2   :  { %10 = vsyncpa [#allocation4], 0  ;;  %s255_s12 = smov [#allocation2]   ;;  %s256_s14 = smov [#allocation5]  }
   0x3   :  { %s17_s13 = sshll.u32 %s255_s12, 4  ;;  %s26_s15 = sshll.u32 %s256_s14, 4  ;;  %s18_s13 = int_to_ptr.vmem [resolvable:$true] %s17_s13  ;;  %s284_s15 = int_to_ptr.vmem [resolvable:$true] %s26_s15 }
   0x4   :  { %s183_s18 = scalar_lea.hbm %s330_s0, 128 }
   0x5   :  { %p184_p0 = scmp.ne.s32.totalorder %s330_s0, %s183_s18  ;;  %p187_p1 = scmp.lt.u32.totalorder %s183_s18, %s330_s0 }
   0x7   :  { %p189_p2 = pnand %p187_p1, %p184_p0 }
   0x9   :  { %192 = shalt.err (!%p189_p2)
}
   0xa   :  { %s193_s23 = scalar_lea.vmem %s18_s13, 128  ;;  %p198_p4 = scmp.lt.s32.totalorder %s18_s13, %s18_s13 }
   0xb   :  { %p194_p3 = scmp.ne.s32.totalorder %s18_s13, %s193_s23  ;;  %p199_p5 = scmp.lt.s32.totalorder %s193_s23, %s193_s23 }
   0xd   :  { %p200_p6 = por %p199_p5, %p198_p4 }
   0xf   :  { %p201_p7 = pnand %p200_p6, %p194_p3 }
  0x11   :  { %204 = shalt.err (!%p201_p7)
}
  0x12   :  { %20 = dma.hbm_to_vmem [thread:$0]  %s330_s0, 128, %s18_s13, [#allocation3]  }
  0x13   :  { %s205_s28 = scalar_lea.hbm %s331_s1, 512 }
  0x14   :  { %p206_p8 = scmp.ne.s32.totalorder %s331_s1, %s205_s28  ;;  %p209_p9 = scmp.lt.u32.totalorder %s205_s28, %s331_s1 }
  0x16   :  { %p211_p10 = pnand %p209_p9, %p206_p8 }
  0x18   :  { %214 = shalt.err (!%p211_p10)
}
  0x19   :  { %s215_s6 = scalar_lea.vmem %s284_s15, 512  ;;  %p220_p12 = scmp.lt.s32.totalorder %s284_s15, %s284_s15 }
  0x1a   :  { %p216_p11 = scmp.ne.s32.totalorder %s284_s15, %s215_s6  ;;  %p221_p13 = scmp.lt.s32.totalorder %s215_s6, %s215_s6 }
  0x1c   :  { %p222_p0 = por %p221_p13, %p220_p12 }
  0x1e   :  { %p223_p1 = pnand %p222_p0, %p216_p11 }
  0x20   :  { %226 = shalt.err (!%p223_p1)
}
  0x21   :  { %s257_s0 = smov 128   ;;  %s258_s7 = smov 8  }
  0x22   :  { %32 = dma.hbm_to_vmem [thread:$0]  %s331_s1, 512, %s284_s15, [#allocation6], %s257_s0, %s257_s0, %s258_s7  }
  0x23   :  { %249 = dma.done.wait [#allocation3], 128  }
  0x24   :  { %250 = vsyncadd [#allocation3], 4294967168 }
  0x25   :  { %251 = dma.done.wait [#allocation6], 512  }
  0x26   :  { %252 = vsyncadd [#allocation6], 4294966784  ;;  %v259_v0 = vmov 0.0|0.0   ;;  %vm260_vm0 = vmmov 0   ;;  %v261_v1 = vmov 0.0   ;;  %v44_v2 = vld [vmem:[#allocation5] sm:$0xff] }
  0x27   :  { %168 = vmatprep.subr.bf16.mxu0 %v259_v0  ;;  %165 = vmatprep.mubr.msk.f32.mxu0 %vm260_vm0, %v261_v1  ;;  %v45_v3 = vld [vmem:[#allocation5 + $0x8] sm:$0xff]  ;;  %v46_v4 = vld [vmem:[#allocation5 + $0x10] sm:$0xff]  ;;  %v47_v6 = vld [vmem:[#allocation5 + $0x18] sm:$0xff]  ;;  %vm48_vm1 = vcmask 261120   ;;  %s262_s11 = smov [#allocation7]   ;;  %v263_v12 = vmov 0  }
  0x28   :  { %v169_v5 = vpack.c.bf16 %v45_v3, %v44_v2  ;;  %v172_v7 = vpack.c.bf16 %v47_v6, %v46_v4  ;;  %v43_v8 = vld [vmem:[#allocation2] sm:$0xff]  ;;  %s140_s12 = sshll.u32 %s262_s11, 4  ;;  %s141_s12 = int_to_ptr.vmem [resolvable:$true] %s140_s12 }
  0x29   :  { %v151_v9 = vld [vmem:[%s332_s2] ss:$0 sm:$0xff]  ;;  %s227_s13 = scalar_lea.vmem %s141_s12, 32  ;;  %p232_p3 = scmp.lt.s32.totalorder %s141_s12, %s141_s12 }
  0x2a   :  { %170 = vmatpush3.bf16.msra.mxu0 %v169_v5  ;;  %p228_p2 = scmp.ne.s32.totalorder %s141_s12, %s227_s13  ;;  %p233_p4 = scmp.lt.s32.totalorder %s227_s13, %s227_s13 }
  0x2b   :  { %171 = vmatprep.subr.bf16.mxu0 %v259_v0 }
  0x2c   :  { %p234_p5 = por %p233_p4, %p232_p3 }
  0x2e   :  { %173 = vmatpush3.bf16.msra.mxu0 %v172_v7  ;;  %p235_p6 = pnand %p234_p5, %p228_p2 }
  0x31   :  { %166 = vmatmul.mubr.msk.f32.vlgmr.msra.gmra.mrb[0].mxu0 %vm48_vm1, %v43_v8 }
 0x104   :  { %v118_v10 = vpop.f32.mrb[0].mxu0 }
 0x105   :  { %vm129_vm2 = vcmp.ge.f32.partialorder %v118_v10, %v151_v9  ;;  %v167_v11 = vpop.f32.mrb[1].mxu0 }
 0x106   :  { %vm130_vm3 = vmpackc.low %vm129_vm2, %vm129_vm2 }
 0x107   :  { %vm131_vm4 = vmpackc.even %vm130_vm3, %vm130_vm3 }
 0x108   :  { %v132_v13 = vsel %vm131_vm4, 16843009, %v263_v12 }
 0x109   :  { %133 = vst [vmem:[#allocation7] sm:$0x3] %v132_v13 }
 0x10a   :  { %238 = shalt.err (!%p235_p6)
}
 0x10b   :  { %s239_s15 = scalar_lea.hbm %s333_s3, 32 }
 0x10c   :  { %p240_p7 = scmp.ne.s32.totalorder %s333_s3, %s239_s15  ;;  %p243_p8 = scmp.lt.u32.totalorder %s239_s15, %s333_s3 }
 0x10e   :  { %p245_p9 = pnand %p243_p8, %p240_p7 }
 0x110   :  { %248 = shalt.err (!%p245_p9)
}
 0x111   :  { %143 = dma.vmem_to_hbm [thread:$0]  %s141_s12, 32, %s333_s3, [#allocation4]  }
 0x112   :  { %253 = dma.done.wait [#allocation4], 32  }
 0x113   :  { %254 = vsyncadd [#allocation4], 4294967264 }
 0x114   :  { %147 = vsyncpa [#allocation3], 1 }
 0x115   :  { %148 = vsyncpa [#allocation6], 1 }
 0x116   :  { %149 = vsyncpa [#allocation4], 1 }

</bundles_post_ra>
